<compile_context>
chip_gen: v6e
topology: v6e:2x2x1
jax: 0.10.0
libtpu: 0.0.40
codegen_flags: <defaults>
</compile_context>

<pallas_src>
import functools

import jax
import jax.numpy as jnp
from jax import lax
from jax.experimental import pallas as pl
from jax.experimental.pallas import tpu as pltpu

LANE = 128
MAX_BLOCK_ROWS = 2048   # (2048, 128) f32 = 1 MiB; 2 inputs x 2 bufs = 4 MiB VMEM


def _adaptive_loss_kernel(p_ref, t_ref, out_ref, acc_ref, *,
                          total_rows, need_mask):
    """Accumulate per-lane partial sums of MSE / L1 / SmoothL1 over row blocks."""
    i = pl.program_id(0)            # parallel split (megacore on v7x)
    j = pl.program_id(1)            # reduction axis over row blocks
    n_j = pl.num_programs(1)
    block_rows = p_ref.shape[0]

    @pl.when(j == 0)
    def _init():
        acc_ref[...] = jnp.zeros_like(acc_ref)

    # Upcast in-kernel (keeps HBM reads at the native input width).
    p = p_ref[...].astype(jnp.float32)
    t = t_ref[...].astype(jnp.float32)
    d = p - t

    if need_mask:
        # Mask rows beyond the real array: covers the partial last block and
        # any fully-out-of-range (clamped) logical blocks from the parallel
        # split.  loss(0) == 0 for all three losses, so zeroing the diff is
        # enough.  (rows, 1) sublane mask, broadcast across lanes by where.
        row0 = (i * n_j + j) * block_rows
        row_ids = lax.broadcasted_iota(jnp.int32, (block_rows, 1), 0) + row0
        d = jnp.where(row_ids < total_rows, d, 0.0)

    ad = jnp.abs(d)
    sq = d * d
    hub = jnp.where(ad < 1.0, 0.5 * sq, ad - 0.5)   # SmoothL1, beta = 1

    # Sublane-only reduction per step; the cross-lane reduce is done once,
    # outside the kernel, on the tiny (splits, 3, 128) output.
    acc_ref[0:1, :] += jnp.sum(sq, axis=0, keepdims=True)
    acc_ref[1:2, :] += jnp.sum(ad, axis=0, keepdims=True)
    acc_ref[2:3, :] += jnp.sum(hub, axis=0, keepdims=True)

    @pl.when(j == n_j - 1)
    def _finalize():
        out_ref[0] = acc_ref[...]


def adaptive_loss(pred, target, weights):
    """Weighted combination of MSE / L1 / SmoothL1 means (AdaptiveLoss.forward)."""
    assert pred.shape == target.shape
    n = int(pred.size)

    p_flat = pred.reshape(-1)          # copy-free reshape of contiguous input
    t_flat = target.reshape(-1)

    n_main = (n // LANE) * LANE
    rem = n - n_main

    sums = jnp.zeros((3,), jnp.float32)

    if n_main:
        rows = n_main // LANE
        if rem:
            # Ragged size (uncommon for NN tensors): slice off the <128-elem tail.
            p2 = p_flat[:n_main].reshape(rows, LANE)
            t2 = t_flat[:n_main].reshape(rows, LANE)
        else:
            p2 = p_flat.reshape(rows, LANE)    # free reshape, no pad, no copy
            t2 = t_flat.reshape(rows, LANE)

        if rows <= MAX_BLOCK_ROWS:
            block_rows = rows                  # full-extent block: always legal
        else:
            block_rows = MAX_BLOCK_ROWS        # multiple of 8 (and 16 for bf16)

        nblocks = pl.cdiv(rows, block_rows)
        num_splits = 2 if nblocks >= 2 else 1  # 2 TensorCores on v7x
        blocks_per_split = pl.cdiv(nblocks, num_splits)

        # Mask is only needed when some logical block extends past `rows`
        # (partial last block, or clamped out-of-range blocks from the split).
        need_mask = (num_splits * blocks_per_split * block_rows) != rows

        def in_map(i, j):
            blk = i * blocks_per_split + j
            # Clamp fully-out-of-range logical blocks; the in-kernel row mask
            # zeroes their contribution, so re-reading the last block is safe.
            return (jnp.minimum(blk, nblocks - 1), 0)

        partial = pl.pallas_call(
            functools.partial(_adaptive_loss_kernel,
                              total_rows=rows, need_mask=need_mask),
            out_shape=jax.ShapeDtypeStruct((num_splits, 3, LANE), jnp.float32),
            grid_spec=pltpu.PrefetchScalarGridSpec(
                num_scalar_prefetch=0,
                grid=(num_splits, blocks_per_split),
                in_specs=[
                    pl.BlockSpec((block_rows, LANE), in_map),   # pred
                    pl.BlockSpec((block_rows, LANE), in_map),   # target
                ],
                out_specs=pl.BlockSpec((1, 3, LANE), lambda i, j: (i, 0, 0)),
                scratch_shapes=[
                    pltpu.VMEM((3, LANE), jnp.float32),   # mse/mae/huber partials
                ],
            ),
            compiler_params=pltpu.CompilerParams(
                dimension_semantics=("parallel", "arbitrary")),
        )(p2, t2)
        sums = sums + jnp.sum(partial, axis=(0, 2))

    if rem:
        # Tiny (<128 element) ragged tail handled with plain JAX.
        tp = p_flat[n_main:].astype(jnp.float32)
        tt = t_flat[n_main:].astype(jnp.float32)
        td = tp - tt
        tad = jnp.abs(td)
        tsq = td * td
        thub = jnp.where(tad < 1.0, 0.5 * tsq, tad - 0.5)
        sums = sums + jnp.stack([jnp.sum(tsq), jnp.sum(tad), jnp.sum(thub)])

    # Softmax over the 3 adaptive weights + final weighting on 3 scalars: do it
    # in the wrapper (no VMEM-padded (1, 3) operand in the kernel).
    nw = jax.nn.softmax(weights.astype(jnp.float32))
    return jnp.dot(nw, sums) / jnp.float32(n)


def _reference(pred, target, weights):
    d = pred.astype(jnp.float32) - target.astype(jnp.float32)
    ad = jnp.abs(d)
    mse = jnp.mean(d * d)
    mae = jnp.mean(ad)
    hub = jnp.mean(jnp.where(ad < 1.0, 0.5 * d * d, ad - 0.5))
    nw = jax.nn.softmax(weights.astype(jnp.float32))
    return nw[0] * mse + nw[1] * mae + nw[2] * hub


if __name__ == "__main__":
    key = jax.random.PRNGKey(0)
    kp, kt, kw = jax.random.split(key, 3)

    # Main example at small NCHW shape (like PyTorch), default-init weights.
    B, C, H, W = 2, 4, 16, 16
    pred = jax.random.normal(kp, (B, C, H, W), dtype=jnp.float32)
    target = jax.random.normal(kt, (B, C, H, W), dtype=jnp.float32)
    n_losses = 3
    weights = jnp.full((n_losses,), 1.0 / n_losses, dtype=jnp.float32)

    loss = adaptive_loss(pred, target, weights)
    loss = jax.block_until_ready(loss)
    ref = _reference(pred, target, weights)
    assert jnp.allclose(loss, ref, rtol=1e-5, atol=1e-6), (loss, ref)

    # Extra sanity checks: multi-block grid with 2-way parallel split, and a
    # ragged size exercising the in-kernel mask + wrapper tail path.
    pred2 = jax.random.normal(kp, (4, 16, 96, 128), dtype=jnp.float32)
    target2 = jax.random.normal(kt, (4, 16, 96, 128), dtype=jnp.float32)
    w2 = jax.random.normal(kw, (3,), dtype=jnp.float32)
    l2 = jax.block_until_ready(adaptive_loss(pred2, target2, w2))
    r2 = _reference(pred2, target2, w2)
    assert jnp.allclose(l2, r2, rtol=1e-4, atol=1e-5), (l2, r2)

    pred3 = jax.random.normal(kp, (3, 5, 7, 11), dtype=jnp.float32)
    target3 = jax.random.normal(kt, (3, 5, 7, 11), dtype=jnp.float32)
    l3 = jax.block_until_ready(adaptive_loss(pred3, target3, weights))
    r3 = _reference(pred3, target3, weights)
    assert jnp.allclose(l3, r3, rtol=1e-4, atol=1e-5), (l3, r3)

    # TODO(synk): self.loss_history (Python-side .item() bookkeeping) has no
    # kernel equivalent and is intentionally omitted.
    print("KERNEL_OK")
</pallas_src>

<mosaic_0001>
module attributes {stable_mosaic.version = 11 : i64} {
  func.func @_adaptive_loss_kernel(%arg0: i32, %arg1: i32, %arg2: memref<16x128xf32, #tpu.memory_space<vmem>>, %arg3: memref<16x128xf32, #tpu.memory_space<vmem>>, %arg4: memref<1x3x128xf32, #tpu.memory_space<vmem>>, %arg5: memref<3x128xf32, #tpu.memory_space<vmem>>) attributes {dimension_semantics = [#tpu.dimension_semantics<parallel>, #tpu.dimension_semantics<arbitrary>], iteration_bounds = array<i64: 1, 1>, scalar_prefetch = 0 : i64, scratch_operands = 1 : i64, tpu.core_type = #tpu.core_type<tc>, window_params = [{transform_indices = @transform_0, window_bounds = array<i64: 16, 128>}, {transform_indices = @transform_1, window_bounds = array<i64: 16, 128>}, {transform_indices = @transform_2, window_bounds = array<i64: 1, 3, 128>}]} {
    %c0_i32 = arith.constant 0 : i32
    %0 = arith.cmpi eq, %arg1, %c0_i32 : i32
    %1 = arith.extui %0 : i1 to i32
    %c0_i32_0 = arith.constant 0 : i32
    %2 = arith.cmpi ne, %1, %c0_i32_0 : i32
    scf.if %2 {
      %cst_21 = arith.constant 0.000000e+00 : f32
      %33 = vector.broadcast %cst_21 : f32 to vector<3x128xf32>
      %c0_22 = arith.constant 0 : index
      %c0_23 = arith.constant 0 : index
      %34 = vector.load %arg5[%c0_22, %c0_23] : memref<3x128xf32, #tpu.memory_space<vmem>>, vector<3x128xf32>
      tpu.vector_store %arg5[%c0_22, %c0_23], %33 {strides = array<i32>} : memref<3x128xf32, #tpu.memory_space<vmem>>, vector<3x128xf32>,
    } else {
    }
    %c0 = arith.constant 0 : index
    %c0_1 = arith.constant 0 : index
    %3 = vector.load %arg2[%c0, %c0_1] : memref<16x128xf32, #tpu.memory_space<vmem>>, vector<16x128xf32>
    %c0_2 = arith.constant 0 : index
    %c0_3 = arith.constant 0 : index
    %4 = vector.load %arg3[%c0_2, %c0_3] : memref<16x128xf32, #tpu.memory_space<vmem>>, vector<16x128xf32>
    %5 = arith.subf %3, %4 : vector<16x128xf32>
    %6 = math.absf %5 : vector<16x128xf32>
    %7 = arith.mulf %5, %5 : vector<16x128xf32>
    %cst = arith.constant 1.000000e+00 : f32
    %8 = vector.broadcast %cst : f32 to vector<16x128xf32>
    %9 = arith.cmpf olt, %6, %8 : vector<16x128xf32>
    %cst_4 = arith.constant 5.000000e-01 : f32
    %10 = vector.broadcast %cst_4 : f32 to vector<16x128xf32>
    %11 = arith.mulf %10, %7 : vector<16x128xf32>
    %cst_5 = arith.constant 5.000000e-01 : f32
    %12 = vector.broadcast %cst_5 : f32 to vector<16x128xf32>
    %13 = arith.subf %6, %12 : vector<16x128xf32>
    %14 = arith.select %9, %11, %13 : vector<16x128xi1>, vector<16x128xf32>
    %c0_6 = arith.constant 0 : index
    %c0_7 = arith.constant 0 : index
    %15 = vector.load %arg5[%c0_6, %c0_7] : memref<3x128xf32, #tpu.memory_space<vmem>>, vector<1x128xf32>
    %cst_8 = arith.constant dense<0.000000e+00> : vector<128xf32>
    %16 = vector.multi_reduction <add>, %7, %cst_8 [0] : vector<16x128xf32> to vector<128xf32>
    %17 = vector.shape_cast %16 : vector<128xf32> to vector<1x128xf32>
    %18 = arith.addf %15, %17 : vector<1x128xf32>
    %c0_9 = arith.constant 0 : index
    %c0_10 = arith.constant 0 : index
    %19 = vector.load %arg5[%c0_9, %c0_10] : memref<3x128xf32, #tpu.memory_space<vmem>>, vector<1x128xf32>
    tpu.vector_store %arg5[%c0_9, %c0_10], %18 {strides = array<i32>} : memref<3x128xf32, #tpu.memory_space<vmem>>, vector<1x128xf32>,
    %c1 = arith.constant 1 : index
    %c0_11 = arith.constant 0 : index
    %20 = vector.load %arg5[%c1, %c0_11] : memref<3x128xf32, #tpu.memory_space<vmem>>, vector<1x128xf32>
    %cst_12 = arith.constant dense<0.000000e+00> : vector<128xf32>
    %21 = vector.multi_reduction <add>, %6, %cst_12 [0] : vector<16x128xf32> to vector<128xf32>
    %22 = vector.shape_cast %21 : vector<128xf32> to vector<1x128xf32>
    %23 = arith.addf %20, %22 : vector<1x128xf32>
    %c1_13 = arith.constant 1 : index
    %c0_14 = arith.constant 0 : index
    %24 = vector.load %arg5[%c1_13, %c0_14] : memref<3x128xf32, #tpu.memory_space<vmem>>, vector<1x128xf32>
    tpu.vector_store %arg5[%c1_13, %c0_14], %23 {strides = array<i32>} : memref<3x128xf32, #tpu.memory_space<vmem>>, vector<1x128xf32>,
    %c2 = arith.constant 2 : index
    %c0_15 = arith.constant 0 : index
    %25 = vector.load %arg5[%c2, %c0_15] : memref<3x128xf32, #tpu.memory_space<vmem>>, vector<1x128xf32>
    %cst_16 = arith.constant dense<0.000000e+00> : vector<128xf32>
    %26 = vector.multi_reduction <add>, %14, %cst_16 [0] : vector<16x128xf32> to vector<128xf32>
    %27 = vector.shape_cast %26 : vector<128xf32> to vector<1x128xf32>
    %28 = arith.addf %25, %27 : vector<1x128xf32>
    %c2_17 = arith.constant 2 : index
    %c0_18 = arith.constant 0 : index
    %29 = vector.load %arg5[%c2_17, %c0_18] : memref<3x128xf32, #tpu.memory_space<vmem>>, vector<1x128xf32>
    tpu.vector_store %arg5[%c2_17, %c0_18], %28 {strides = array<i32>} : memref<3x128xf32, #tpu.memory_space<vmem>>, vector<1x128xf32>,
    %c0_i32_19 = arith.constant 0 : i32
    %30 = arith.cmpi eq, %arg1, %c0_i32_19 : i32
    %31 = arith.extui %30 : i1 to i32
    %c0_i32_20 = arith.constant 0 : i32
    %32 = arith.cmpi ne, %31, %c0_i32_20 : i32
    scf.if %32 {
      %c0_21 = arith.constant 0 : index
      %c0_22 = arith.constant 0 : index
      %33 = vector.load %arg5[%c0_21, %c0_22] : memref<3x128xf32, #tpu.memory_space<vmem>>, vector<3x128xf32>
      %c0_23 = arith.constant 0 : index
      %c0_24 = arith.constant 0 : index
      %c0_25 = arith.constant 0 : index
      %34 = vector.load %arg4[%c0_23, %c0_24, %c0_25] : memref<1x3x128xf32, #tpu.memory_space<vmem>>, vector<1x3x128xf32>
      %35 = vector.shape_cast %34 : vector<1x3x128xf32> to vector<3x128xf32>
      %36 = vector.shape_cast %33 : vector<3x128xf32> to vector<1x3x128xf32>
      tpu.vector_store %arg4[%c0_23, %c0_24, %c0_25], %36 {strides = array<i32>} : memref<1x3x128xf32, #tpu.memory_space<vmem>>, vector<1x3x128xf32>,
    } else {
    }
    return
  }
  func.func @transform_0(%arg0: i32, %arg1: i32) -> (i32, i32) {
    %c1_i32 = arith.constant 1 : i32
    %0 = arith.muli %arg0, %c1_i32 : i32
    %1 = arith.addi %0, %arg1 : i32
    %c0_i32 = arith.constant 0 : i32
    %2 = arith.minsi %1, %c0_i32 : i32
    %c0_i32_0 = arith.constant 0 : i32
    %c0_i32_1 = arith.constant 0 : i32
    return %2, %c0_i32_0 : i32, i32
  }
  func.func @transform_1(%arg0: i32, %arg1: i32) -> (i32, i32) {
    %c1_i32 = arith.constant 1 : i32
    %0 = arith.muli %arg0, %c1_i32 : i32
    %1 = arith.addi %0, %arg1 : i32
    %c0_i32 = arith.constant 0 : i32
    %2 = arith.minsi %1, %c0_i32 : i32
    %c0_i32_0 = arith.constant 0 : i32
    %c0_i32_1 = arith.constant 0 : i32
    return %2, %c0_i32_0 : i32, i32
  }
  func.func @transform_2(%arg0: i32, %arg1: i32) -> (i32, i32, i32) {
    %c0_i32 = arith.constant 0 : i32
    %c0_i32_0 = arith.constant 0 : i32
    %c0_i32_1 = arith.constant 0 : i32
    return %arg0, %c0_i32, %c0_i32_0 : i32, i32, i32
  }
}

</mosaic_0001>

<bundles_post_ra>
// kernel: tpu_custom_call.1
= control target key start
LH: loop header
LB: loop body
LE: loop exit
PB: predicated region body
PF: predicated region fallthrough
CT: control target
= control target key end

     0   :  { %7 = vsyncpa [#allocation4], 0  ;;  %s207_s0 = inlined_call_operand.hbm [shape: f32[16,128], index: 0, kind: input, shape index: {}]   ;;  %s208_s1 = inlined_call_operand.hbm [shape: f32[16,128], index: 1, kind: input, shape index: {}]   ;;  %s209_s2 = inlined_call_operand.vmem [shape: f32[1,3,128], index: 2, kind: output, shape index: {}]  }
   0x1   :  { %8 = vsyncpa [#allocation6], 0  ;;  %s178_s9 = smov [#allocation3]  }
   0x2   :  { %s20_s10 = sshll.u32 %s178_s9, 4  ;;  %s21_s10 = int_to_ptr.vmem [resolvable:$true] %s20_s10 }
   0x3   :  { %s142_s11 = scalar_lea.vmem %s21_s10, 256  ;;  %p147_p1 = scmp.lt.s32.totalorder %s21_s10, %s21_s10 }
   0x4   :  { %p143_p0 = scmp.ne.s32.totalorder %s21_s10, %s142_s11  ;;  %p148_p2 = scmp.lt.s32.totalorder %s142_s11, %s142_s11 }
   0x6   :  { %p149_p3 = por %p148_p2, %p147_p1 }
   0x8   :  { %p150_p4 = pnand %p149_p3, %p143_p0 }
   0xa   :  { %153 = shalt.err (!%p150_p4)
}
   0xb   :  { %s179_s12 = smov 128   ;;  %s180_s13 = smov 8  }
   0xc   :  { %26 = dma.hbm_to_vmem [thread:$0]  %s207_s0, 256, %s21_s10, [#allocation4], %s179_s12, %s179_s12, %s180_s13  }
   0xd   :  { %s181_s16 = smov [#allocation5]  }
   0xe   :  { %s38_s17 = sshll.u32 %s181_s16, 4  ;;  %s39_s17 = int_to_ptr.vmem [resolvable:$true] %s38_s17 }
   0xf   :  { %s162_s18 = scalar_lea.vmem %s39_s17, 256  ;;  %p167_p6 = scmp.lt.s32.totalorder %s39_s17, %s39_s17 }
  0x10   :  { %p163_p5 = scmp.ne.s32.totalorder %s39_s17, %s162_s18  ;;  %p168_p7 = scmp.lt.s32.totalorder %s162_s18, %s162_s18 }
  0x12   :  { %p169_p8 = por %p168_p7, %p167_p6 }
  0x14   :  { %p170_p9 = pnand %p169_p8, %p163_p5 }
  0x16   :  { %173 = shalt.err (!%p170_p9)
}
  0x17   :  { %44 = dma.hbm_to_vmem [thread:$0]  %s208_s1, 256, %s39_s17, [#allocation6], %s179_s12, %s179_s12, %s180_s13  }
  0x18   :  { %174 = dma.done.wait [#allocation4], 256  }
  0x19   :  { %175 = vsyncadd [#allocation4], 4294967040 }
  0x1a   :  { %176 = dma.done.wait [#allocation6], 256  }
  0x1b   :  { %177 = vsyncadd [#allocation6], 4294967040  ;;  %v182_v0 = vmov 0.0   ;;  %v64_v1 = vld [vmem:[#allocation3] sm:$0xff]  ;;  %v65_v2 = vld [vmem:[#allocation3 + $0x8] sm:$0xff] }
  0x1c   :  { %63 = vst [vmem:[#allocation2] sm:$0x7] %v182_v0  ;;  %v66_v3 = vld [vmem:[#allocation5] sm:$0xff]  ;;  %v67_v4 = vld [vmem:[#allocation5 + $0x8] sm:$0xff] }
  0x1d   :  { %v68_v5 = vsub.f32 %v64_v1, %v66_v3  ;;  %v69_v6 = vsub.f32 %v65_v2, %v67_v4 }
  0x1f   :  { %v72_v7 = vmul.f32 %v68_v5, %v68_v5  ;;  %v70_v8 = vand.u32 2147483647, %v68_v5  ;;  %v73_v9 = vmul.f32 %v69_v6, %v69_v6  ;;  %v71_v10 = vand.u32 2147483647, %v69_v6 }
  0x21   :  { %v76_v11 = vmul.f32 0.5, %v72_v7  ;;  %vm74_vm0 = vcmp.lt.f32.partialorder %v70_v8, 1.0  ;;  %v127_v12 = vadd.f32 -0.5, %v70_v8  ;;  %v77_v13 = vmul.f32 0.5, %v73_v9 }
  0x22   :  { %v83_v14 = vadd.f32 %v73_v9, %v72_v7  ;;  %v93_v15 = vadd.f32 %v71_v10, %v70_v8  ;;  %vm75_vm1 = vcmp.lt.f32.partialorder %v71_v10, 1.0  ;;  %v128_v16 = vadd.f32 -0.5, %v71_v10 }
  0x23   :  { %v80_v17 = vsel %vm74_vm0, %v76_v11, %v127_v12  ;;  %v82_v33 = vld [vmem:[#allocation2] sm:$0x1]  ;;  %v92_v34 = vld [vmem:[#allocation2 + $0x1] sm:$0x1]  ;;  %v102_v41 = vld [vmem:[#allocation2 + $0x2] sm:$0x1] }
  0x24   :  { %v84_v18 = vrot.slane %v83_v14, 4  ;;  %v94_v19 = vrot.slane %v93_v15, 4  ;;  %v81_v20 = vsel %vm75_vm1, %v77_v13, %v128_v16 }
  0x25   :  { %v103_v23 = vadd.f32 %v81_v20, %v80_v17 }
  0x26   :  { %v85_v21 = vadd.f32 %v84_v18, %v83_v14  ;;  %v95_v22 = vadd.f32 %v94_v19, %v93_v15 }
  0x27   :  { %v104_v26 = vrot.slane %v103_v23, 4 }
  0x28   :  { %v86_v24 = vrot.slane %v85_v21, 2  ;;  %v96_v25 = vrot.slane %v95_v22, 2 }
  0x29   :  { %v105_v29 = vadd.f32 %v104_v26, %v103_v23 }
  0x2a   :  { %v87_v27 = vadd.f32 %v86_v24, %v85_v21  ;;  %v97_v28 = vadd.f32 %v96_v25, %v95_v22 }
  0x2b   :  { %v106_v32 = vrot.slane %v105_v29, 2 }
  0x2c   :  { %v88_v30 = vrot.slane %v87_v27, 1  ;;  %v98_v31 = vrot.slane %v97_v28, 1 }
  0x2d   :  { %v107_v37 = vadd.f32 %v106_v32, %v105_v29 }
  0x2e   :  { %v89_v35 = vadd.f32 %v88_v30, %v87_v27  ;;  %v99_v36 = vadd.f32 %v98_v31, %v97_v28 }
  0x2f   :  { %v108_v40 = vrot.slane %v107_v37, 1 }
  0x30   :  { %v90_v38 = vadd.f32 %v89_v35, %v82_v33  ;;  %v100_v39 = vadd.f32 %v99_v36, %v92_v34 }
  0x31   :  { %v109_v42 = vadd.f32 %v108_v40, %v107_v37 }
  0x32   :  { %91 = vst [vmem:[#allocation2] sm:$0x1] %v90_v38  ;;  %101 = vst [vmem:[#allocation2 + $0x1] sm:$0x1] %v100_v39 }
  0x33   :  { %v110_v43 = vadd.f32 %v109_v42, %v102_v41 }
  0x35   :  { %111 = vst [vmem:[#allocation2 + $0x2] sm:$0x1] %v110_v43 }
  0x3c   :  { %v115_v44 = vld [vmem:[#allocation2] sm:$0x7] }
  0x3d   :  { %116 = vst [vmem:[%s209_s2] sm:$0x7] %v115_v44 }
  0x3e   :  { %121 = vsyncpa [#allocation4], 1 }
  0x3f   :  { %122 = vsyncpa [#allocation6], 1 }

</bundles_post_ra>
